<compile_context>
chip_gen: v7x
topology: tpu7x:2x2x1
jax: 0.10.0
libtpu: 0.0.40
codegen_flags: <defaults>
</compile_context>

<pallas_src>
import jax
import jax.numpy as jnp
from jax import lax
from jax.experimental import pallas as pl
from jax.experimental.pallas import tpu as pltpu

SUBLANE = 8  # f32 sublane width


def gru_fused_kernel(ids_ref, emb_ref, wih_ref, whh_ref, bx_ref, bhhn_ref,
                     wfc_ref, bfc_ref, out_ref):
    """Single-invocation kernel: embed -> GRU over T steps -> final Linear.

    Shapes seen by the kernel (all whole-array, VMEM resident):
      ids_ref  : (T*Bp, 1) int32  token ids, time-major (t*Bp + b), Bp = padded batch
      emb_ref  : (V, E)    f32    embedding table
      wih_ref  : (E, 3H)   f32    fused input->gate weights, columns [r | z | n]
      whh_ref  : (H, 3H)   f32    fused hidden->gate weights, columns [r | z | n]
      bx_ref   : (1, 3H)   f32    b_ih[r,z,n] + b_hh[r,z] (b_hh[n] excluded)
      bhhn_ref : (1, H)    f32    b_hh[n] (stays inside the r*(...) term)
      wfc_ref  : (H, O)    f32    final Linear weight (transposed)
      bfc_ref  : (1, O)    f32    final Linear bias
      out_ref  : (Bp, O)          prediction (padded batch)
    """
    TB = ids_ref.shape[0]
    V, E = emb_ref.shape
    H = whh_ref.shape[0]
    Bp, O = out_ref.shape
    T = TB // Bp

    # --- In-kernel embedding gather as a one-hot matmul (no XLA gather op). ---
    ids = ids_ref[...]                                                # (TB, 1) int32
    onehot = (lax.broadcasted_iota(jnp.int32, (TB, V), 1) == ids
              ).astype(jnp.float32)                                   # (TB, V)
    emb = jnp.dot(onehot, emb_ref[...],
                  preferred_element_type=jnp.float32)                 # (TB, E)

    # --- Hoisted, time-independent input projection for ALL timesteps, with the
    #     three gate matmuls fused into one (E, 3H) dot and biases folded in. ---
    gates_x = (jnp.dot(emb, wih_ref[...], preferred_element_type=jnp.float32)
               + bx_ref[...])                                         # (TB, 3H)

    whh = whh_ref[...]                                                # (H, 3H)
    bhh_n = jnp.broadcast_to(bhhn_ref[...], (Bp, H))                  # hoisted bcast

    # --- Serial recurrence: one fused (Bp,H)x(H,3H) dot + gates per step.
    #     Bp is a multiple of 8, so each slice is sublane-aligned. ---
    h = jnp.zeros((Bp, H), jnp.float32)
    for t in range(T):                       # static, fully unrolled (T is small)
        gx = gates_x[t * Bp:(t + 1) * Bp, :]                          # (Bp, 3H)
        gh = jnp.dot(h, whh, preferred_element_type=jnp.float32)      # (Bp, 3H)
        r = jax.nn.sigmoid(gx[:, :H] + gh[:, :H])
        z = jax.nn.sigmoid(gx[:, H:2 * H] + gh[:, H:2 * H])
        n = jnp.tanh(gx[:, 2 * H:] + r * (gh[:, 2 * H:] + bhh_n))
        h = (1.0 - z) * n + z * h

    # --- Final Linear on the last hidden state. ---
    out_ref[...] = (jnp.dot(h, wfc_ref[...], preferred_element_type=jnp.float32)
                    + bfc_ref[...]).astype(out_ref.dtype)


@jax.jit
def simple_model_forward(text, params):
    """text: (T, B) int32 token ids (seq-major, matching nn.GRU batch_first=False)."""
    T, B = text.shape
    V, E = params["embedding"].shape
    H = params["whh"].shape[1]
    O = params["wfc"].shape[1]

    # Pad batch to the sublane width so per-timestep slices inside the kernel are
    # (8,128)-tile aligned. Padded rows use token 0 and are dropped at the end;
    # GRU rows are independent, so this cannot affect the real outputs.
    Bp = ((B + SUBLANE - 1) // SUBLANE) * SUBLANE
    text_p = jnp.pad(text, ((0, 0), (0, Bp - B)))                         # (T, Bp)

    # Fuse per-gate weights along columns, gate order [r | z | n].
    wih_cat = jnp.transpose(params["wih"], (1, 0, 2)).reshape(E, 3 * H)   # (E, 3H)
    whh_cat = jnp.transpose(params["whh"], (1, 0, 2)).reshape(H, 3 * H)   # (H, 3H)

    bih_flat = params["bih"][:, 0, :]                                     # (3, H)
    bhh_flat = params["bhh"][:, 0, :]                                     # (3, H)
    # Fold b_ih (all gates) + b_hh (r, z only) into one bias on the hoisted
    # x-projection; b_hh[n] must stay inside r * (h@Whh_n + bhh_n).
    bx = (bih_flat.reshape(1, 3 * H)
          + jnp.concatenate([bhh_flat[0], bhh_flat[1], jnp.zeros((H,), jnp.float32)]
                            ).reshape(1, 3 * H))                          # (1, 3H)
    bhh_n = bhh_flat[2:3]                                                 # (1, H)

    ids = text_p.reshape(T * Bp, 1).astype(jnp.int32)                     # time-major

    vmem = pl.BlockSpec(memory_space=pltpu.MemorySpace.VMEM)
    out_p = pl.pallas_call(
        gru_fused_kernel,
        out_shape=jax.ShapeDtypeStruct((Bp, O), jnp.float32),
        in_specs=[vmem] * 8,
        out_specs=vmem,
    )(ids, params["embedding"], wih_cat, whh_cat, bx, bhh_n,
      params["wfc"], params["bfc"])
    return out_p[:B]


def ref_forward(text, params):
    """Pure-JAX reference (same math as PyTorch Embedding -> GRU -> Linear)."""
    emb = jnp.take(params["embedding"], text, axis=0)   # (T, B, E)
    H = params["whh"].shape[1]

    def step(h, x):
        r = jax.nn.sigmoid(x @ params["wih"][0] + params["bih"][0]
                           + h @ params["whh"][0] + params["bhh"][0])
        z = jax.nn.sigmoid(x @ params["wih"][1] + params["bih"][1]
                           + h @ params["whh"][1] + params["bhh"][1])
        n = jnp.tanh(x @ params["wih"][2] + params["bih"][2]
                     + r * (h @ params["whh"][2] + params["bhh"][2]))
        return (1.0 - z) * n + z * h, None

    h0 = jnp.zeros((emb.shape[1], H), jnp.float32)
    hT, _ = lax.scan(step, h0, emb)
    return hT @ params["wfc"] + params["bfc"][0]


def init_params(key, vocab_size, embedding_dim, hidden_dim, output_dim):
    ks = jax.random.split(key, 8)
    k = 1.0 / jnp.sqrt(hidden_dim)
    uni = lambda kk, shape, bound: jax.random.uniform(
        kk, shape, jnp.float32, -bound, bound)
    return {
        # nn.Embedding default init ~ N(0, 1)
        "embedding": jax.random.normal(ks[0], (vocab_size, embedding_dim),
                                       jnp.float32),
        # GRU weights, gate order [r, z, n], stored transposed & stacked by gate.
        "wih": uni(ks[1], (3, embedding_dim, hidden_dim), k),
        "whh": uni(ks[2], (3, hidden_dim, hidden_dim), k),
        "bih": uni(ks[3], (3, 1, hidden_dim), k),
        "bhh": uni(ks[4], (3, 1, hidden_dim), k),
        # Linear(hidden_dim, output_dim), stored transposed.
        "wfc": uni(ks[5], (hidden_dim, output_dim), k),
        "bfc": uni(ks[6], (1, output_dim), k),
    }


if __name__ == "__main__":
    vocab_size, embedding_dim, hidden_dim, output_dim = 64, 32, 32, 8
    seq_len, batch = 8, 4

    root = jax.random.PRNGKey(0)
    k_params, k_text = jax.random.split(root)
    params = init_params(k_params, vocab_size, embedding_dim, hidden_dim,
                         output_dim)
    text = jax.random.randint(k_text, (seq_len, batch), 0, vocab_size,
                              dtype=jnp.int32)   # (T, B) token ids

    pred = jax.block_until_ready(simple_model_forward(text, params))
    assert pred.shape == (batch, output_dim), pred.shape

    ref = jax.block_until_ready(ref_forward(text, params))
    assert jnp.allclose(pred, ref, rtol=2e-4, atol=2e-4), (
        "mismatch vs reference", float(jnp.max(jnp.abs(pred - ref))))

    print("KERNEL_OK")
</pallas_src>

<mosaic_0001>
module attributes {stable_mosaic.version = 11 : i64} {
  func.func @gru_fused_kernel(%arg0: memref<64x1xi32, #tpu.memory_space<vmem>>, %arg1: memref<64x32xf32, #tpu.memory_space<vmem>>, %arg2: memref<32x96xf32, #tpu.memory_space<vmem>>, %arg3: memref<32x96xf32, #tpu.memory_space<vmem>>, %arg4: memref<1x96xf32, #tpu.memory_space<vmem>>, %arg5: memref<1x32xf32, #tpu.memory_space<vmem>>, %arg6: memref<32x8xf32, #tpu.memory_space<vmem>>, %arg7: memref<1x8xf32, #tpu.memory_space<vmem>>, %arg8: memref<8x8xf32, #tpu.memory_space<vmem>>) attributes {dimension_semantics = [], scalar_prefetch = 0 : i64, scratch_operands = 0 : i64, tpu.core_type = #tpu.core_type<tc>} {
    %c0 = arith.constant 0 : index
    %c0_0 = arith.constant 0 : index
    %0 = vector.load %arg0[%c0, %c0_0] : memref<64x1xi32, #tpu.memory_space<vmem>>, vector<64x1xi32>
    %1 = tpu.iota {dimensions = array<i32: 1>} : vector<64x64xi32>
    %2 = vector.broadcast %0 : vector<64x1xi32> to vector<64x64xi32>
    %3 = arith.cmpi eq, %1, %2 : vector<64x64xi32>
    %4 = arith.extui %3 : vector<64x64xi1> to vector<64x64xi32>
    %5 = arith.sitofp %4 : vector<64x64xi32> to vector<64x64xf32>
    %c0_1 = arith.constant 0 : index
    %c0_2 = arith.constant 0 : index
    %6 = vector.load %arg1[%c0_1, %c0_2] : memref<64x32xf32, #tpu.memory_space<vmem>>, vector<64x32xf32>
    %cst = arith.constant dense<0.000000e+00> : vector<64x32xf32>
    %7 = tpu.matmul %5, %6, %cst {dimension_numbers = #tpu.dot_dimension_numbers<[1], [0], [0], [1], [0, 0, 1, 1], [], []>} : vector<64x64xf32>, vector<64x32xf32>, vector<64x32xf32> -> vector<64x32xf32>
    %c0_3 = arith.constant 0 : index
    %c0_4 = arith.constant 0 : index
    %8 = vector.load %arg2[%c0_3, %c0_4] : memref<32x96xf32, #tpu.memory_space<vmem>>, vector<32x96xf32>
    %cst_5 = arith.constant dense<0.000000e+00> : vector<64x96xf32>
    %9 = tpu.matmul %7, %8, %cst_5 {dimension_numbers = #tpu.dot_dimension_numbers<[1], [0], [0], [1], [0, 0, 1, 1], [], []>} : vector<64x32xf32>, vector<32x96xf32>, vector<64x96xf32> -> vector<64x96xf32>
    %c0_6 = arith.constant 0 : index
    %c0_7 = arith.constant 0 : index
    %10 = vector.load %arg4[%c0_6, %c0_7] : memref<1x96xf32, #tpu.memory_space<vmem>>, vector<1x96xf32>
    %11 = vector.broadcast %10 : vector<1x96xf32> to vector<64x96xf32>
    %12 = arith.addf %9, %11 : vector<64x96xf32>
    %c0_8 = arith.constant 0 : index
    %c0_9 = arith.constant 0 : index
    %13 = vector.load %arg3[%c0_8, %c0_9] : memref<32x96xf32, #tpu.memory_space<vmem>>, vector<32x96xf32>
    %c0_10 = arith.constant 0 : index
    %c0_11 = arith.constant 0 : index
    %14 = vector.load %arg5[%c0_10, %c0_11] : memref<1x32xf32, #tpu.memory_space<vmem>>, vector<1x32xf32>
    %15 = vector.shape_cast %14 : vector<1x32xf32> to vector<1x32xf32>
    %16 = vector.broadcast %15 : vector<1x32xf32> to vector<8x32xf32>
    %cst_12 = arith.constant 0.000000e+00 : f32
    %17 = vector.broadcast %cst_12 : f32 to vector<8x32xf32>
    %18 = vector.extract_strided_slice %12 {offsets = [0, 0], sizes = [8, 96], strides = [1, 1]} : vector<64x96xf32> to vector<8x96xf32>
    %cst_13 = arith.constant dense<0.000000e+00> : vector<8x96xf32>
    %19 = tpu.matmul %17, %13, %cst_13 {dimension_numbers = #tpu.dot_dimension_numbers<[1], [0], [0], [1], [0, 0, 1, 1], [], []>} : vector<8x32xf32>, vector<32x96xf32>, vector<8x96xf32> -> vector<8x96xf32>
    %20 = vector.extract_strided_slice %18 {offsets = [0, 0], sizes = [8, 32], strides = [1, 1]} : vector<8x96xf32> to vector<8x32xf32>
    %21 = vector.extract_strided_slice %19 {offsets = [0, 0], sizes = [8, 32], strides = [1, 1]} : vector<8x96xf32> to vector<8x32xf32>
    %22 = arith.addf %20, %21 : vector<8x32xf32>
    %23 = arith.negf %22 : vector<8x32xf32>
    %24 = math.exp %23 : vector<8x32xf32>
    %cst_14 = arith.constant 1.000000e+00 : f32
    %25 = vector.broadcast %cst_14 : f32 to vector<8x32xf32>
    %26 = arith.addf %25, %24 : vector<8x32xf32>
    %27 = arith.divf %25, %26 : vector<8x32xf32>
    %28 = vector.extract_strided_slice %18 {offsets = [0, 32], sizes = [8, 32], strides = [1, 1]} : vector<8x96xf32> to vector<8x32xf32>
    %29 = vector.extract_strided_slice %19 {offsets = [0, 32], sizes = [8, 32], strides = [1, 1]} : vector<8x96xf32> to vector<8x32xf32>
    %30 = arith.addf %28, %29 : vector<8x32xf32>
    %31 = arith.negf %30 : vector<8x32xf32>
    %32 = math.exp %31 : vector<8x32xf32>
    %cst_15 = arith.constant 1.000000e+00 : f32
    %33 = vector.broadcast %cst_15 : f32 to vector<8x32xf32>
    %34 = arith.addf %33, %32 : vector<8x32xf32>
    %35 = arith.divf %33, %34 : vector<8x32xf32>
    %36 = vector.extract_strided_slice %18 {offsets = [0, 64], sizes = [8, 32], strides = [1, 1]} : vector<8x96xf32> to vector<8x32xf32>
    %37 = vector.extract_strided_slice %19 {offsets = [0, 64], sizes = [8, 32], strides = [1, 1]} : vector<8x96xf32> to vector<8x32xf32>
    %38 = arith.addf %37, %16 : vector<8x32xf32>
    %39 = arith.mulf %27, %38 : vector<8x32xf32>
    %40 = arith.addf %36, %39 : vector<8x32xf32>
    %41 = math.tanh %40 : vector<8x32xf32>
    %cst_16 = arith.constant 1.000000e+00 : f32
    %42 = vector.broadcast %cst_16 : f32 to vector<8x32xf32>
    %43 = arith.subf %42, %35 : vector<8x32xf32>
    %44 = arith.mulf %43, %41 : vector<8x32xf32>
    %45 = arith.mulf %35, %17 : vector<8x32xf32>
    %46 = arith.addf %44, %45 : vector<8x32xf32>
    %47 = vector.extract_strided_slice %12 {offsets = [8, 0], sizes = [8, 96], strides = [1, 1]} : vector<64x96xf32> to vector<8x96xf32>
    %cst_17 = arith.constant dense<0.000000e+00> : vector<8x96xf32>
    %48 = tpu.matmul %46, %13, %cst_17 {dimension_numbers = #tpu.dot_dimension_numbers<[1], [0], [0], [1], [0, 0, 1, 1], [], []>} : vector<8x32xf32>, vector<32x96xf32>, vector<8x96xf32> -> vector<8x96xf32>
    %49 = vector.extract_strided_slice %47 {offsets = [0, 0], sizes = [8, 32], strides = [1, 1]} : vector<8x96xf32> to vector<8x32xf32>
    %50 = vector.extract_strided_slice %48 {offsets = [0, 0], sizes = [8, 32], strides = [1, 1]} : vector<8x96xf32> to vector<8x32xf32>
    %51 = arith.addf %49, %50 : vector<8x32xf32>
    %52 = arith.negf %51 : vector<8x32xf32>
    %53 = math.exp %52 : vector<8x32xf32>
    %cst_18 = arith.constant 1.000000e+00 : f32
    %54 = vector.broadcast %cst_18 : f32 to vector<8x32xf32>
    %55 = arith.addf %54, %53 : vector<8x32xf32>
    %56 = arith.divf %54, %55 : vector<8x32xf32>
    %57 = vector.extract_strided_slice %47 {offsets = [0, 32], sizes = [8, 32], strides = [1, 1]} : vector<8x96xf32> to vector<8x32xf32>
    %58 = vector.extract_strided_slice %48 {offsets = [0, 32], sizes = [8, 32], strides = [1, 1]} : vector<8x96xf32> to vector<8x32xf32>
    %59 = arith.addf %57, %58 : vector<8x32xf32>
    %60 = arith.negf %59 : vector<8x32xf32>
    %61 = math.exp %60 : vector<8x32xf32>
    %cst_19 = arith.constant 1.000000e+00 : f32
    %62 = vector.broadcast %cst_19 : f32 to vector<8x32xf32>
    %63 = arith.addf %62, %61 : vector<8x32xf32>
    %64 = arith.divf %62, %63 : vector<8x32xf32>
    %65 = vector.extract_strided_slice %47 {offsets = [0, 64], sizes = [8, 32], strides = [1, 1]} : vector<8x96xf32> to vector<8x32xf32>
    %66 = vector.extract_strided_slice %48 {offsets = [0, 64], sizes = [8, 32], strides = [1, 1]} : vector<8x96xf32> to vector<8x32xf32>
    %67 = arith.addf %66, %16 : vector<8x32xf32>
    %68 = arith.mulf %56, %67 : vector<8x32xf32>
    %69 = arith.addf %65, %68 : vector<8x32xf32>
    %70 = math.tanh %69 : vector<8x32xf32>
    %cst_20 = arith.constant 1.000000e+00 : f32
    %71 = vector.broadcast %cst_20 : f32 to vector<8x32xf32>
    %72 = arith.subf %71, %64 : vector<8x32xf32>
    %73 = arith.mulf %72, %70 : vector<8x32xf32>
    %74 = arith.mulf %64, %46 : vector<8x32xf32>
    %75 = arith.addf %73, %74 : vector<8x32xf32>
    %76 = vector.extract_strided_slice %12 {offsets = [16, 0], sizes = [8, 96], strides = [1, 1]} : vector<64x96xf32> to vector<8x96xf32>
    %cst_21 = arith.constant dense<0.000000e+00> : vector<8x96xf32>
    %77 = tpu.matmul %75, %13, %cst_21 {dimension_numbers = #tpu.dot_dimension_numbers<[1], [0], [0], [1], [0, 0, 1, 1], [], []>} : vector<8x32xf32>, vector<32x96xf32>, vector<8x96xf32> -> vector<8x96xf32>
    %78 = vector.extract_strided_slice %76 {offsets = [0, 0], sizes = [8, 32], strides = [1, 1]} : vector<8x96xf32> to vector<8x32xf32>
    %79 = vector.extract_strided_slice %77 {offsets = [0, 0], sizes = [8, 32], strides = [1, 1]} : vector<8x96xf32> to vector<8x32xf32>
    %80 = arith.addf %78, %79 : vector<8x32xf32>
    %81 = arith.negf %80 : vector<8x32xf32>
    %82 = math.exp %81 : vector<8x32xf32>
    %cst_22 = arith.constant 1.000000e+00 : f32
    %83 = vector.broadcast %cst_22 : f32 to vector<8x32xf32>
    %84 = arith.addf %83, %82 : vector<8x32xf32>
    %85 = arith.divf %83, %84 : vector<8x32xf32>
    %86 = vector.extract_strided_slice %76 {offsets = [0, 32], sizes = [8, 32], strides = [1, 1]} : vector<8x96xf32> to vector<8x32xf32>
    %87 = vector.extract_strided_slice %77 {offsets = [0, 32], sizes = [8, 32], strides = [1, 1]} : vector<8x96xf32> to vector<8x32xf32>
    %88 = arith.addf %86, %87 : vector<8x32xf32>
    %89 = arith.negf %88 : vector<8x32xf32>
    %90 = math.exp %89 : vector<8x32xf32>
    %cst_23 = arith.constant 1.000000e+00 : f32
    %91 = vector.broadcast %cst_23 : f32 to vector<8x32xf32>
    %92 = arith.addf %91, %90 : vector<8x32xf32>
    %93 = arith.divf %91, %92 : vector<8x32xf32>
    %94 = vector.extract_strided_slice %76 {offsets = [0, 64], sizes = [8, 32], strides = [1, 1]} : vector<8x96xf32> to vector<8x32xf32>
    %95 = vector.extract_strided_slice %77 {offsets = [0, 64], sizes = [8, 32], strides = [1, 1]} : vector<8x96xf32> to vector<8x32xf32>
    %96 = arith.addf %95, %16 : vector<8x32xf32>
    %97 = arith.mulf %85, %96 : vector<8x32xf32>
    %98 = arith.addf %94, %97 : vector<8x32xf32>
    %99 = math.tanh %98 : vector<8x32xf32>
    %cst_24 = arith.constant 1.000000e+00 : f32
    %100 = vector.broadcast %cst_24 : f32 to vector<8x32xf32>
    %101 = arith.subf %100, %93 : vector<8x32xf32>
    %102 = arith.mulf %101, %99 : vector<8x32xf32>
    %103 = arith.mulf %93, %75 : vector<8x32xf32>
    %104 = arith.addf %102, %103 : vector<8x32xf32>
    %105 = vector.extract_strided_slice %12 {offsets = [24, 0], sizes = [8, 96], strides = [1, 1]} : vector<64x96xf32> to vector<8x96xf32>
    %cst_25 = arith.constant dense<0.000000e+00> : vector<8x96xf32>
    %106 = tpu.matmul %104, %13, %cst_25 {dimension_numbers = #tpu.dot_dimension_numbers<[1], [0], [0], [1], [0, 0, 1, 1], [], []>} : vector<8x32xf32>, vector<32x96xf32>, vector<8x96xf32> -> vector<8x96xf32>
    %107 = vector.extract_strided_slice %105 {offsets = [0, 0], sizes = [8, 32], strides = [1, 1]} : vector<8x96xf32> to vector<8x32xf32>
    %108 = vector.extract_strided_slice %106 {offsets = [0, 0], sizes = [8, 32], strides = [1, 1]} : vector<8x96xf32> to vector<8x32xf32>
    %109 = arith.addf %107, %108 : vector<8x32xf32>
    %110 = arith.negf %109 : vector<8x32xf32>
    %111 = math.exp %110 : vector<8x32xf32>
    %cst_26 = arith.constant 1.000000e+00 : f32
    %112 = vector.broadcast %cst_26 : f32 to vector<8x32xf32>
    %113 = arith.addf %112, %111 : vector<8x32xf32>
    %114 = arith.divf %112, %113 : vector<8x32xf32>
    %115 = vector.extract_strided_slice %105 {offsets = [0, 32], sizes = [8, 32], strides = [1, 1]} : vector<8x96xf32> to vector<8x32xf32>
    %116 = vector.extract_strided_slice %106 {offsets = [0, 32], sizes = [8, 32], strides = [1, 1]} : vector<8x96xf32> to vector<8x32xf32>
    %117 = arith.addf %115, %116 : vector<8x32xf32>
    %118 = arith.negf %117 : vector<8x32xf32>
    %119 = math.exp %118 : vector<8x32xf32>
    %cst_27 = arith.constant 1.000000e+00 : f32
    %120 = vector.broadcast %cst_27 : f32 to vector<8x32xf32>
    %121 = arith.addf %120, %119 : vector<8x32xf32>
    %122 = arith.divf %120, %121 : vector<8x32xf32>
    %123 = vector.extract_strided_slice %105 {offsets = [0, 64], sizes = [8, 32], strides = [1, 1]} : vector<8x96xf32> to vector<8x32xf32>
    %124 = vector.extract_strided_slice %106 {offsets = [0, 64], sizes = [8, 32], strides = [1, 1]} : vector<8x96xf32> to vector<8x32xf32>
    %125 = arith.addf %124, %16 : vector<8x32xf32>
    %126 = arith.mulf %114, %125 : vector<8x32xf32>
    %127 = arith.addf %123, %126 : vector<8x32xf32>
    %128 = math.tanh %127 : vector<8x32xf32>
    %cst_28 = arith.constant 1.000000e+00 : f32
    %129 = vector.broadcast %cst_28 : f32 to vector<8x32xf32>
    %130 = arith.subf %129, %122 : vector<8x32xf32>
    %131 = arith.mulf %130, %128 : vector<8x32xf32>
    %132 = arith.mulf %122, %104 : vector<8x32xf32>
    %133 = arith.addf %131, %132 : vector<8x32xf32>
    %134 = vector.extract_strided_slice %12 {offsets = [32, 0], sizes = [8, 96], strides = [1, 1]} : vector<64x96xf32> to vector<8x96xf32>
    %cst_29 = arith.constant dense<0.000000e+00> : vector<8x96xf32>
    %135 = tpu.matmul %133, %13, %cst_29 {dimension_numbers = #tpu.dot_dimension_numbers<[1], [0], [0], [1], [0, 0, 1, 1], [], []>} : vector<8x32xf32>, vector<32x96xf32>, vector<8x96xf32> -> vector<8x96xf32>
    %136 = vector.extract_strided_slice %134 {offsets = [0, 0], sizes = [8, 32], strides = [1, 1]} : vector<8x96xf32> to vector<8x32xf32>
    %137 = vector.extract_strided_slice %135 {offsets = [0, 0], sizes = [8, 32], strides = [1, 1]} : vector<8x96xf32> to vector<8x32xf32>
    %138 = arith.addf %136, %137 : vector<8x32xf32>
    %139 = arith.negf %138 : vector<8x32xf32>
    %140 = math.exp %139 : vector<8x32xf32>
    %cst_30 = arith.constant 1.000000e+00 : f32
    %141 = vector.broadcast %cst_30 : f32 to vector<8x32xf32>
    %142 = arith.addf %141, %140 : vector<8x32xf32>
    %143 = arith.divf %141, %142 : vector<8x32xf32>
    %144 = vector.extract_strided_slice %134 {offsets = [0, 32], sizes = [8, 32], strides = [1, 1]} : vector<8x96xf32> to vector<8x32xf32>
    %145 = vector.extract_strided_slice %135 {offsets = [0, 32], sizes = [8, 32], strides = [1, 1]} : vector<8x96xf32> to vector<8x32xf32>
    %146 = arith.addf %144, %145 : vector<8x32xf32>
    %147 = arith.negf %146 : vector<8x32xf32>
    %148 = math.exp %147 : vector<8x32xf32>
    %cst_31 = arith.constant 1.000000e+00 : f32
    %149 = vector.broadcast %cst_31 : f32 to vector<8x32xf32>
    %150 = arith.addf %149, %148 : vector<8x32xf32>
    %151 = arith.divf %149, %150 : vector<8x32xf32>
    %152 = vector.extract_strided_slice %134 {offsets = [0, 64], sizes = [8, 32], strides = [1, 1]} : vector<8x96xf32> to vector<8x32xf32>
    %153 = vector.extract_strided_slice %135 {offsets = [0, 64], sizes = [8, 32], strides = [1, 1]} : vector<8x96xf32> to vector<8x32xf32>
    %154 = arith.addf %153, %16 : vector<8x32xf32>
    %155 = arith.mulf %143, %154 : vector<8x32xf32>
    %156 = arith.addf %152, %155 : vector<8x32xf32>
    %157 = math.tanh %156 : vector<8x32xf32>
    %cst_32 = arith.constant 1.000000e+00 : f32
    %158 = vector.broadcast %cst_32 : f32 to vector<8x32xf32>
    %159 = arith.subf %158, %151 : vector<8x32xf32>
    %160 = arith.mulf %159, %157 : vector<8x32xf32>
    %161 = arith.mulf %151, %133 : vector<8x32xf32>
    %162 = arith.addf %160, %161 : vector<8x32xf32>
    %163 = vector.extract_strided_slice %12 {offsets = [40, 0], sizes = [8, 96], strides = [1, 1]} : vector<64x96xf32> to vector<8x96xf32>
    %cst_33 = arith.constant dense<0.000000e+00> : vector<8x96xf32>
    %164 = tpu.matmul %162, %13, %cst_33 {dimension_numbers = #tpu.dot_dimension_numbers<[1], [0], [0], [1], [0, 0, 1, 1], [], []>} : vector<8x32xf32>, vector<32x96xf32>, vector<8x96xf32> -> vector<8x96xf32>
    %165 = vector.extract_strided_slice %163 {offsets = [0, 0], sizes = [8, 32], strides = [1, 1]} : vector<8x96xf32> to vector<8x32xf32>
    %166 = vector.extract_strided_slice %164 {offsets = [0, 0], sizes = [8, 32], strides = [1, 1]} : vector<8x96xf32> to vector<8x32xf32>
    %167 = arith.addf %165, %166 : vector<8x32xf32>
    %168 = arith.negf %167 : vector<8x32xf32>
    %169 = math.exp %168 : vector<8x32xf32>
    %cst_34 = arith.constant 1.000000e+00 : f32
    %170 = vector.broadcast %cst_34 : f32 to vector<8x32xf32>
    %171 = arith.addf %170, %169 : vector<8x32xf32>
    %172 = arith.divf %170, %171 : vector<8x32xf32>
    %173 = vector.extract_strided_slice %163 {offsets = [0, 32], sizes = [8, 32], strides = [1, 1]} : vector<8x96xf32> to vector<8x32xf32>
    %174 = vector.extract_strided_slice %164 {offsets = [0, 32], sizes = [8, 32], strides = [1, 1]} : vector<8x96xf32> to vector<8x32xf32>
    %175 = arith.addf %173, %174 : vector<8x32xf32>
    %176 = arith.negf %175 : vector<8x32xf32>
    %177 = math.exp %176 : vector<8x32xf32>
    %cst_35 = arith.constant 1.000000e+00 : f32
    %178 = vector.broadcast %cst_35 : f32 to vector<8x32xf32>
    %179 = arith.addf %178, %177 : vector<8x32xf32>
    %180 = arith.divf %178, %179 : vector<8x32xf32>
    %181 = vector.extract_strided_slice %163 {offsets = [0, 64], sizes = [8, 32], strides = [1, 1]} : vector<8x96xf32> to vector<8x32xf32>
    %182 = vector.extract_strided_slice %164 {offsets = [0, 64], sizes = [8, 32], strides = [1, 1]} : vector<8x96xf32> to vector<8x32xf32>
    %183 = arith.addf %182, %16 : vector<8x32xf32>
    %184 = arith.mulf %172, %183 : vector<8x32xf32>
    %185 = arith.addf %181, %184 : vector<8x32xf32>
    %186 = math.tanh %185 : vector<8x32xf32>
    %cst_36 = arith.constant 1.000000e+00 : f32
    %187 = vector.broadcast %cst_36 : f32 to vector<8x32xf32>
    %188 = arith.subf %187, %180 : vector<8x32xf32>
    %189 = arith.mulf %188, %186 : vector<8x32xf32>
    %190 = arith.mulf %180, %162 : vector<8x32xf32>
    %191 = arith.addf %189, %190 : vector<8x32xf32>
    %192 = vector.extract_strided_slice %12 {offsets = [48, 0], sizes = [8, 96], strides = [1, 1]} : vector<64x96xf32> to vector<8x96xf32>
    %cst_37 = arith.constant dense<0.000000e+00> : vector<8x96xf32>
    %193 = tpu.matmul %191, %13, %cst_37 {dimension_numbers = #tpu.dot_dimension_numbers<[1], [0], [0], [1], [0, 0, 1, 1], [], []>} : vector<8x32xf32>, vector<32x96xf32>, vector<8x96xf32> -> vector<8x96xf32>
    %194 = vector.extract_strided_slice %192 {offsets = [0, 0], sizes = [8, 32], strides = [1, 1]} : vector<8x96xf32> to vector<8x32xf32>
    %195 = vector.extract_strided_slice %193 {offsets = [0, 0], sizes = [8, 32], strides = [1, 1]} : vector<8x96xf32> to vector<8x32xf32>
    %196 = arith.addf %194, %195 : vector<8x32xf32>
    %197 = arith.negf %196 : vector<8x32xf32>
    %198 = math.exp %197 : vector<8x32xf32>
    %cst_38 = arith.constant 1.000000e+00 : f32
    %199 = vector.broadcast %cst_38 : f32 to vector<8x32xf32>
    %200 = arith.addf %199, %198 : vector<8x32xf32>
    %201 = arith.divf %199, %200 : vector<8x32xf32>
    %202 = vector.extract_strided_slice %192 {offsets = [0, 32], sizes = [8, 32], strides = [1, 1]} : vector<8x96xf32> to vector<8x32xf32>
    %203 = vector.extract_strided_slice %193 {offsets = [0, 32], sizes = [8, 32], strides = [1, 1]} : vector<8x96xf32> to vector<8x32xf32>
    %204 = arith.addf %202, %203 : vector<8x32xf32>
    %205 = arith.negf %204 : vector<8x32xf32>
    %206 = math.exp %205 : vector<8x32xf32>
    %cst_39 = arith.constant 1.000000e+00 : f32
    %207 = vector.broadcast %cst_39 : f32 to vector<8x32xf32>
    %208 = arith.addf %207, %206 : vector<8x32xf32>
    %209 = arith.divf %207, %208 : vector<8x32xf32>
    %210 = vector.extract_strided_slice %192 {offsets = [0, 64], sizes = [8, 32], strides = [1, 1]} : vector<8x96xf32> to vector<8x32xf32>
    %211 = vector.extract_strided_slice %193 {offsets = [0, 64], sizes = [8, 32], strides = [1, 1]} : vector<8x96xf32> to vector<8x32xf32>
    %212 = arith.addf %211, %16 : vector<8x32xf32>
    %213 = arith.mulf %201, %212 : vector<8x32xf32>
    %214 = arith.addf %210, %213 : vector<8x32xf32>
    %215 = math.tanh %214 : vector<8x32xf32>
    %cst_40 = arith.constant 1.000000e+00 : f32
    %216 = vector.broadcast %cst_40 : f32 to vector<8x32xf32>
    %217 = arith.subf %216, %209 : vector<8x32xf32>
    %218 = arith.mulf %217, %215 : vector<8x32xf32>
    %219 = arith.mulf %209, %191 : vector<8x32xf32>
    %220 = arith.addf %218, %219 : vector<8x32xf32>
    %221 = vector.extract_strided_slice %12 {offsets = [56, 0], sizes = [8, 96], strides = [1, 1]} : vector<64x96xf32> to vector<8x96xf32>
    %cst_41 = arith.constant dense<0.000000e+00> : vector<8x96xf32>
    %222 = tpu.matmul %220, %13, %cst_41 {dimension_numbers = #tpu.dot_dimension_numbers<[1], [0], [0], [1], [0, 0, 1, 1], [], []>} : vector<8x32xf32>, vector<32x96xf32>, vector<8x96xf32> -> vector<8x96xf32>
    %223 = vector.extract_strided_slice %221 {offsets = [0, 0], sizes = [8, 32], strides = [1, 1]} : vector<8x96xf32> to vector<8x32xf32>
    %224 = vector.extract_strided_slice %222 {offsets = [0, 0], sizes = [8, 32], strides = [1, 1]} : vector<8x96xf32> to vector<8x32xf32>
    %225 = arith.addf %223, %224 : vector<8x32xf32>
    %226 = arith.negf %225 : vector<8x32xf32>
    %227 = math.exp %226 : vector<8x32xf32>
    %cst_42 = arith.constant 1.000000e+00 : f32
    %228 = vector.broadcast %cst_42 : f32 to vector<8x32xf32>
    %229 = arith.addf %228, %227 : vector<8x32xf32>
    %230 = arith.divf %228, %229 : vector<8x32xf32>
    %231 = vector.extract_strided_slice %221 {offsets = [0, 32], sizes = [8, 32], strides = [1, 1]} : vector<8x96xf32> to vector<8x32xf32>
    %232 = vector.extract_strided_slice %222 {offsets = [0, 32], sizes = [8, 32], strides = [1, 1]} : vector<8x96xf32> to vector<8x32xf32>
    %233 = arith.addf %231, %232 : vector<8x32xf32>
    %234 = arith.negf %233 : vector<8x32xf32>
    %235 = math.exp %234 : vector<8x32xf32>
    %cst_43 = arith.constant 1.000000e+00 : f32
    %236 = vector.broadcast %cst_43 : f32 to vector<8x32xf32>
    %237 = arith.addf %236, %235 : vector<8x32xf32>
    %238 = arith.divf %236, %237 : vector<8x32xf32>
    %239 = vector.extract_strided_slice %221 {offsets = [0, 64], sizes = [8, 32], strides = [1, 1]} : vector<8x96xf32> to vector<8x32xf32>
    %240 = vector.extract_strided_slice %222 {offsets = [0, 64], sizes = [8, 32], strides = [1, 1]} : vector<8x96xf32> to vector<8x32xf32>
    %241 = arith.addf %240, %16 : vector<8x32xf32>
    %242 = arith.mulf %230, %241 : vector<8x32xf32>
    %243 = arith.addf %239, %242 : vector<8x32xf32>
    %244 = math.tanh %243 : vector<8x32xf32>
    %cst_44 = arith.constant 1.000000e+00 : f32
    %245 = vector.broadcast %cst_44 : f32 to vector<8x32xf32>
    %246 = arith.subf %245, %238 : vector<8x32xf32>
    %247 = arith.mulf %246, %244 : vector<8x32xf32>
    %248 = arith.mulf %238, %220 : vector<8x32xf32>
    %249 = arith.addf %247, %248 : vector<8x32xf32>
    %c0_45 = arith.constant 0 : index
    %c0_46 = arith.constant 0 : index
    %250 = vector.load %arg6[%c0_45, %c0_46] : memref<32x8xf32, #tpu.memory_space<vmem>>, vector<32x8xf32>
    %cst_47 = arith.constant dense<0.000000e+00> : vector<8x8xf32>
    %251 = tpu.matmul %249, %250, %cst_47 {dimension_numbers = #tpu.dot_dimension_numbers<[1], [0], [0], [1], [0, 0, 1, 1], [], []>} : vector<8x32xf32>, vector<32x8xf32>, vector<8x8xf32> -> vector<8x8xf32>
    %c0_48 = arith.constant 0 : index
    %c0_49 = arith.constant 0 : index
    %252 = vector.load %arg7[%c0_48, %c0_49] : memref<1x8xf32, #tpu.memory_space<vmem>>, vector<1x8xf32>
    %253 = vector.broadcast %252 : vector<1x8xf32> to vector<8x8xf32>
    %254 = arith.addf %251, %253 : vector<8x8xf32>
    %c0_50 = arith.constant 0 : index
    %c0_51 = arith.constant 0 : index
    %255 = vector.load %arg8[%c0_50, %c0_51] : memref<8x8xf32, #tpu.memory_space<vmem>>, vector<8x8xf32>
    tpu.vector_store %arg8[%c0_50, %c0_51], %254 {strides = array<i32>} : memref<8x8xf32, #tpu.memory_space<vmem>>, vector<8x8xf32>,
    return
  }
}

</mosaic_0001>

<bundles_post_ra>
// kernel: simple_model_forward.1
= control target key start
LH: loop header
LB: loop body
LE: loop exit
PB: predicated region body
PF: predicated region fallthrough
CT: control target
= control target key end

     0   :  { %v1682_v0 = vmov 0   ;;  %v37_v27 = vlaneseq  ;;  %vm95_vm0 = vcmask 523264   ;;  %v1683_v31 = vmov 0.0   ;;  %s1686_s30 = smov 64   ;;  %s1989_s0 = inlined_call_operand.vmem [shape: s32[64,1], index: 0, kind: input, shape index: {}]   ;;  %s1990_s1 = inlined_call_operand.vmem [shape: f32[64,32], index: 1, kind: input, shape index: {}]   ;;  %s1991_s2 = inlined_call_operand.vmem [shape: f32[32,96], index: 2, kind: input, shape index: {}]   ;;  %s1992_s3 = inlined_call_operand.vmem [shape: f32[32,96], index: 3, kind: input, shape index: {}]   ;;  %s1993_s5 = inlined_call_operand.vmem [shape: f32[1,32], index: 5, kind: input, shape index: {}]   ;;  %s1994_s4 = inlined_call_operand.vmem [shape: f32[1,96], index: 4, kind: input, shape index: {}]   ;;  %s1995_s6 = inlined_call_operand.vmem [shape: f32[32,8], index: 6, kind: input, shape index: {}]   ;;  %s1996_s7 = inlined_call_operand.vmem [shape: f32[1,8], index: 7, kind: input, shape index: {}]   ;;  %s1997_s8 = inlined_call_operand.vmem [shape: f32[8,8], index: 8, kind: output, shape index: {}]  }
   0x1   :  { %1633 = vset.pattern.permute.xlu1 %v1682_v0  ;;  %1632 = vset.pattern.permute.xlu0 %v1682_v0  ;;  %v31_v1 = vld [vmem:[%s1989_s0 + $0x10] sm:$0xff]  ;;  %v29_v2 = vld [vmem:[%s1989_s0] sm:$0xff]  ;;  %v32_v3 = vld [vmem:[%s1989_s0 + $0x18] sm:$0xff]  ;;  %v1684_v46 = vmov 0.0|0.0   ;;  %vm1685_vm9 = vmmov 0   ;;  %vm236_vm10 = vcmask 261120  }
   0x2   :  { %46 = vperm.xlu1 %1633, %v31_v1   ;;  %40 = vperm.xlu0 %1632, %v29_v2   ;;  %v30_v4 = vld [vmem:[%s1989_s0 + $0x8] sm:$0xff]  ;;  %v87_v5 = vld [vmem:[%s1990_s1] sm:$0xff]  ;;  %v89_v7 = vld [vmem:[%s1990_s1 + $0x10] sm:$0xff]  ;;  %v38_v28 = vand.u32 127, %v37_v27  ;;  %vm1279_vm11 = vcmask 64512  }
   0x3   :  { %v88_v6 = vld [vmem:[%s1990_s1 + $0x8] sm:$0xff]  ;;  %v90_v8 = vld [vmem:[%s1990_s1 + $0x18] sm:$0xff]  ;;  %v91_v11 = vld [vmem:[%s1990_s1 + $0x20] sm:$0xff] }
   0x4   :  { %v1548_v9 = vpack.c.bf16 %v88_v6, %v87_v5  ;;  %v1552_v10 = vpack.c.bf16 %v90_v8, %v89_v7  ;;  %v92_v12 = vld [vmem:[%s1990_s1 + $0x28] sm:$0xff]  ;;  %v33_v14 = vld [vmem:[%s1989_s0 + $0x20] sm:$0xff]  ;;  %v93_v16 = vld [vmem:[%s1990_s1 + $0x30] sm:$0xff] }
   0x5   :  { %v34_v13 = vld [vmem:[%s1989_s0 + $0x28] sm:$0xff]  ;;  %v1556_v15 = vpack.c.bf16 %v92_v12, %v91_v11  ;;  %v94_v17 = vld [vmem:[%s1990_s1 + $0x38] sm:$0xff]  ;;  %v35_v19 = vld [vmem:[%s1989_s0 + $0x30] sm:$0xff] }
   0x6   :  { %49 = vperm.xlu1 %1633, %v32_v3   ;;  %43 = vperm.xlu0 %1632, %v30_v4   ;;  %v36_v18 = vld [vmem:[%s1989_s0 + $0x38] sm:$0xff]  ;;  %v1560_v20 = vpack.c.bf16 %v94_v17, %v93_v16  ;;  %v225_v21 = vld [vmem:[%s1991_s2] sm:$0xff]  ;;  %v226_v22 = vld [vmem:[%s1991_s2 + $0x8] sm:$0xff] }
   0x7   :  { %1549 = vmatprep.subr.bf16.mxu0 %v1548_v9  ;;  %v227_v23 = vld [vmem:[%s1991_s2 + $0x10] sm:$0xff]  ;;  %v1564_v24 = vpack.c.bf16 %v226_v22, %v225_v21  ;;  %v228_v25 = vld [vmem:[%s1991_s2 + $0x18] sm:$0xff]  ;;  %v366_v47 = vld [vmem:[%s1992_s3] sm:$0xff] }
   0x8   :  { %1551 = vmatpush3.bf16.msra.mxu0 %v1548_v9  ;;  %v1568_v26 = vpack.c.bf16 %v228_v25, %v227_v23  ;;  %v367_v48 = vld [vmem:[%s1992_s3 + $0x8] sm:$0xff]  ;;  %v368_v50 = vld [vmem:[%s1992_s3 + $0x10] sm:$0xff]  ;;  %v369_v51 = vld [vmem:[%s1992_s3 + $0x18] sm:$0xff] }
   0x9   :  { %1553 = vmatprep.subr.bf16.mxu0 %v1552_v10  ;;  %1565 = vmatprep.subr.bf16.mxu1 %v1564_v24  ;;  %v1817_v49 = vpack.c.bf16 %v367_v48, %v366_v47  ;;  %v1827_v52 = vpack.c.bf16 %v369_v51, %v368_v50  ;;  %v1310_v53 = vld [vmem:[%s1993_s5] ss:$0 sm:$0xff] }
   0xa   :  { %55 = vperm.xlu1 %1633, %v34_v13   ;;  %52 = vperm.xlu0 %1632, %v33_v14   ;;  %v1301_v62 = vld [vmem:[%s1994_s4] ss:$0 sm:$0xff]  ;;  %s1687_s4 = smov 96  }
   0xb   :  { %1567 = vmatpush3.bf16.msra.mxu1 %v1564_v24 }
   0xc   :  { %1555 = vmatpush3.bf16.msra.mxu0 %v1552_v10  ;;  %1569 = vmatprep.subr.bf16.mxu1 %v1568_v26 }
   0xd   :  { %1557 = vmatprep.subr.bf16.mxu0 %v1556_v15 }
   0xe   :  { %61 = vperm.xlu1 %1633, %v36_v18   ;;  %58 = vperm.xlu0 %1632, %v35_v19  }
   0xf   :  { %1571 = vmatpush3.bf16.msra.mxu1 %v1568_v26 }
  0x10   :  { %1559 = vmatpush3.bf16.msra.mxu0 %v1556_v15  ;;  %1572 = vmatprep.subr.bf16.mxu1 %v1684_v46 }
  0x11   :  { %1561 = vmatprep.subr.bf16.mxu0 %v1560_v20 }
  0x12   :  { %456 = vrot.lane.b32.xlu0 %v1310_v53, %s1686_s30 }
  0x14   :  { %1563 = vmatpush3.bf16.msra.mxu0 %v1560_v20 }
  0x15   :  { %1578 = vmatprep.subr.bf16.mxu0 %v1684_v46 }
  0x81   :  { %v47_v29 = vpop.permute.xlu1 %46  ;;  %v41_v30 = vpop.permute.xlu0 %40 }
  0x82   :  { %vm63_vm1 = vcmp.eq.s32.totalorder %v38_v28, %v41_v30  ;;  %vm65_vm2 = vcmp.eq.s32.totalorder %v38_v28, %v47_v29 }
  0x83   :  { %v1285_v32 = vsel %vm63_vm1, 1.0, %v1683_v31  ;;  %v1287_v35 = vsel %vm65_vm2, 1.0, %v1683_v31 }
  0x84   :  { %1417 = vmatprep.mubr.msk.f32.mxu0 %vm95_vm0, %v1285_v32 }
  0x85   :  { %v50_v33 = vpop.permute.xlu1 %49  ;;  %v44_v34 = vpop.permute.xlu0 %43 }
  0x86   :  { %vm64_vm3 = vcmp.eq.s32.totalorder %v38_v28, %v44_v34  ;;  %vm66_vm4 = vcmp.eq.s32.totalorder %v38_v28, %v50_v33 }
  0x87   :  { %v1286_v36 = vsel %vm64_vm3, 1.0, %v1683_v31  ;;  %v1288_v39 = vsel %vm66_vm4, 1.0, %v1683_v31 }
  0x88   :  { %1418 = vmatmul.mubr.msk.f32.vlgmr.msra.gmra.mrb[0].mxu0 %vm95_vm0, %v1286_v36 }
  0x89   :  { %v56_v37 = vpop.permute.xlu1 %55  ;;  %1420 = vmatprep.mubr.msk.f32.mxu0 %vm95_vm0, %v1287_v35  ;;  %v53_v38 = vpop.permute.xlu0 %52  ;;  %1580 = vmatpush3.bf16.msra.mxu0 %v1817_v49 }
  0x8a   :  { %vm67_vm5 = vcmp.eq.s32.totalorder %v38_v28, %v53_v38  ;;  %vm68_vm6 = vcmp.eq.s32.totalorder %v38_v28, %v56_v37  ;;  %1581 = vmatprep.subr.bf16.mxu0 %v1684_v46 }
  0x8b   :  { %v1289_v40 = vsel %vm67_vm5, 1.0, %v1683_v31  ;;  %v1290_v43 = vsel %vm68_vm6, 1.0, %v1683_v31 }
  0x8c   :  { %1421 = vmatmul.mubr.msk.f32.gmra.mrb[2].mxu0 %vm95_vm0, %v1288_v39 }
  0x8d   :  { %v62_v41 = vpop.permute.xlu1 %61  ;;  %1423 = vmatprep.mubr.msk.f32.mxu0 %vm95_vm0, %v1289_v40  ;;  %v59_v42 = vpop.permute.xlu0 %58  ;;  %1583 = vmatpush3.bf16.msra.mxu0 %v1827_v52 }
  0x8e   :  { %vm69_vm7 = vcmp.eq.s32.totalorder %v38_v28, %v59_v42  ;;  %vm70_vm8 = vcmp.eq.s32.totalorder %v38_v28, %v62_v41  ;;  %1590 = vmatprep.subr.bf16.mxu0 %v1684_v46 }
  0x8f   :  { %v1291_v44 = vsel %vm69_vm7, 1.0, %v1683_v31  ;;  %v1292_v45 = vsel %vm70_vm8, 1.0, %v1683_v31 }
  0x90   :  { %1424 = vmatmul.mubr.msk.f32.gmra.mrb[4].mxu0 %vm95_vm0, %v1290_v43 }
  0x91   :  { %1426 = vmatprep.mubr.msk.f32.mxu0 %vm95_vm0, %v1291_v44  ;;  %v1875_v14 = vpop.permute.xlu0 %456 }
  0x94   :  { %1427 = vmatmul.mubr.msk.f32.gmra.mrb[6].mxu0 %vm95_vm0, %v1292_v45 }
  0x95   :  { %1468 = vmatprep.mubr.msk.f32.mxu0 %vm1685_vm9, %v1683_v31 }
 0x15b   :  { %v1419_v54 = vpop.f32.mrb[0].mxu0 }
 0x15c   :  { %v186_v55 = vpop.f32.mrb[1].mxu0 }
 0x15d   :  { %1437 = vmatprep.mubr.msk.f32.mxu1 %vm236_vm10, %v186_v55 }
 0x15e   :  { %1438 = vmatmul.mubr.msk.f32.vlgmr.msra.gmra.mrb[0].mxu1 %vm236_vm10, %v1419_v54 }
 0x15f   :  { %1574 = vmatpush3.bf16.msra.mxu1 %v1817_v49  ;;  %v1422_v56 = vpop.f32.mrb[2].mxu0 }
 0x160   :  { %v196_v57 = vpop.f32.mrb[3].mxu0  ;;  %1575 = vmatprep.subr.bf16.mxu1 %v1684_v46 }
 0x161   :  { %1440 = vmatprep.mubr.msk.f32.mxu1 %vm236_vm10, %v196_v57 }
 0x162   :  { %1441 = vmatmul.mubr.msk.f32.gmra.mrb[2].mxu1 %vm236_vm10, %v1422_v56 }
 0x163   :  { %v1425_v58 = vpop.f32.mrb[4].mxu0  ;;  %1577 = vmatpush3.bf16.msra.mxu1 %v1827_v52 }
 0x164   :  { %v206_v59 = vpop.f32.mrb[5].mxu0  ;;  %1584 = vmatprep.subr.bf16.mxu1 %v1684_v46 }
 0x165   :  { %1443 = vmatprep.mubr.msk.f32.mxu1 %vm236_vm10, %v206_v59 }
 0x166   :  { %1444 = vmatmul.mubr.msk.f32.gmra.mrb[4].mxu1 %vm236_vm10, %v1425_v58 }
 0x167   :  { %v1428_v60 = vpop.f32.mrb[6].mxu0 }
 0x168   :  { %v216_v61 = vpop.f32.mrb[7].mxu0 }
 0x169   :  { %1446 = vmatprep.mubr.msk.f32.mxu1 %vm236_vm10, %v216_v61 }
 0x16a   :  { %1447 = vmatmul.mubr.msk.f32.gmra.mrb[6].mxu1 %vm236_vm10, %v1428_v60 }
 0x16b   :  { %1457 = vmatprep.mubr.msk.f32.mxu1 %vm1685_vm9, %v1683_v31 }
 0x16e   :  { %1458 = vmatmul.mubr.f32.vlgmr.msra.gmra.mrb[8].mxu1 %v1683_v31 }
 0x16f   :  { %1586 = vmatpush3.bf16.msra.mxu1 %v1817_v49  ;;  %1479 = vmatprep.mubr.msk.f32.mxu1 %vm1685_vm9, %v1683_v31 }
 0x170   :  { %1587 = vmatprep.subr.bf16.mxu1 %v1684_v46 }
 0x173   :  { %1589 = vmatpush3.bf16.msra.mxu1 %v1827_v52 }
 0x174   :  { %1596 = vmatprep.subr.bf16.mxu1 %v1684_v46 }
 0x231   :  { %v1439_v63 = vpop.f32.mrb[0].mxu1 }
 0x232   :  { %v1861_v0 = vadd.f32 %v1439_v63, %v1301_v62  ;;  %v327_v1 = vpop.f32.mrb[1].mxu1 }
 0x233   :  { %v328_v18 = vadd.f32 %v1301_v62, %v327_v1 }
 0x235   :  { %v1442_v2 = vpop.f32.mrb[2].mxu1 }
 0x236   :  { %v1863_v3 = vadd.f32 %v1442_v2, %v1301_v62  ;;  %v337_v4 = vpop.f32.mrb[3].mxu1 }
 0x237   :  { %v1865_v5 = vadd.f32 %v1301_v62, %v337_v4 }
 0x239   :  { %v1445_v6 = vpop.f32.mrb[4].mxu1 }
 0x23a   :  { %v1867_v7 = vadd.f32 %v1445_v6, %v1301_v62  ;;  %v347_v8 = vpop.f32.mrb[5].mxu1 }
 0x23b   :  { %v1869_v9 = vadd.f32 %v1301_v62, %v347_v8 }
 0x23d   :  { %v1448_v10 = vpop.f32.mrb[6].mxu1 }
 0x23e   :  { %v1871_v11 = vadd.f32 %v1448_v10, %v1301_v62  ;;  %v357_v12 = vpop.f32.mrb[7].mxu1 }
 0x23f   :  { %v1873_v13 = vadd.f32 %v1301_v62, %v357_v12 }
 0x241   :  { %v445_v15 = vpop.f32.mrb[8].mxu1 }
 0x242   :  { %v1459_v16 = vpop.f32.mrb[9].mxu1  ;;  %v459_v17 = vadd.f32 %v1875_v14, %v445_v15  ;;  %v449_v19 = vadd.f32 %v445_v15, %v328_v18 }
 0x244   :  { %461 = vrot.lane.b32.xlu1 %v459_v17, %s1686_s30  ;;  %v1311_v20 = vmul.f32 -1.442695, %v449_v19 }
 0x246   :  { %1634 = vpow2.f32 %v1311_v20 }
 0x250   :  { %v1635_v21 = vpop.eup %1634 }
 0x251   :  { %v453_v22 = vadd.f32 1.0, %v1635_v21 }
 0x253   :  { %1636 = vrcp.f32 %v453_v22 }
 0x25d   :  { %v1637_v23 = vpop.eup %1636 }
 0x25e   :  { %v471_v29 = vsub.f32 1.0, %v1637_v23  ;;  %v477_v32 = vmul.f32 0.0, %v1637_v23 }
 0x2b6   :  { %v462_v24 = vpop.permute.xlu1 %461 }
 0x2b7   :  { %v464_v25 = vmul.f32 %v1637_v23, %v462_v24 }
 0x2b9   :  { %466 = vrot.lane.b32.xlu0 %v464_v25, %s1686_s30 }
 0x32b   :  { %v467_v26 = vpop.permute.xlu0 %466 }
 0x32c   :  { %v469_v27 = vadd.f32 %v467_v26, %v328_v18 }
 0x32e   :  { %1638 = vtanh.f32 %v469_v27 }
 0x338   :  { %v1639_v28 = vpop.eup %1638 }
 0x339   :  { %473 = vrot.lane.b32.xlu1 %v1639_v28, %s1687_s4 }
 0x3ab   :  { %v474_v30 = vpop.permute.xlu1 %473 }
 0x3ac   :  { %v476_v33 = vmul.f32 %v474_v30, %v471_v29 }
 0x3ae   :  { %v478_v34 = vadd.f32 %v477_v32, %v476_v33 }
 0x3b0   :  { %480 = vrot.lane.b32.xlu0 %v478_v34, %s1687_s4 }
 0x422   :  { %v481_v35 = vpop.permute.xlu0 %480 }
 0x423   :  { %1469 = vmatmul.mubr.msk.f32.vlgmr.msra.gmra.mrb[8].mxu0 %vm236_vm10, %v481_v35 }
 0x424   :  { %1592 = vmatpush3.bf16.msra.mxu0 %v1817_v49  ;;  %1490 = vmatprep.mubr.msk.f32.mxu0 %vm1685_vm9, %v1683_v31 }
 0x425   :  { %1593 = vmatprep.subr.bf16.mxu0 %v1684_v46 }
 0x428   :  { %1595 = vmatpush3.bf16.msra.mxu0 %v1827_v52 }
 0x429   :  { %1602 = vmatprep.subr.bf16.mxu0 %v1684_v46 }
 0x4f6   :  { %v550_v36 = vpop.f32.mrb[8].mxu0 }
 0x4f7   :  { %v561_v37 = vadd.f32 %v550_v36, %v1875_v14  ;;  %v1470_v38 = vpop.f32.mrb[9].mxu0  ;;  %v554_v39 = vadd.f32 %v550_v36, %v1861_v0 }
 0x4f9   :  { %563 = vrot.lane.b32.xlu1 %v561_v37, %s1686_s30  ;;  %v1313_v40 = vmul.f32 -1.442695, %v554_v39 }
 0x4fb   :  { %1640 = vpow2.f32 %v1313_v40 }
 0x505   :  { %v1641_v41 = vpop.eup %1640 }
 0x506   :  { %v558_v42 = vadd.f32 1.0, %v1641_v41 }
 0x508   :  { %1642 = vrcp.f32 %v558_v42 }
 0x512   :  { %v1643_v43 = vpop.eup %1642 }
 0x513   :  { %v573_v51 = vsub.f32 1.0, %v1643_v43  ;;  %v579_v54 = vmul.f32 %v1643_v43, %v478_v34 }
 0x56b   :  { %v564_v44 = vpop.permute.xlu1 %563 }
 0x56c   :  { %v566_v45 = vmul.f32 %v1643_v43, %v564_v44 }
 0x56e   :  { %568 = vrot.lane.b32.xlu0 %v566_v45, %s1686_s30 }
 0x5e0   :  { %v569_v47 = vpop.permute.xlu0 %568 }
 0x5e1   :  { %v571_v48 = vadd.f32 %v569_v47, %v1861_v0 }
 0x5e3   :  { %1644 = vtanh.f32 %v571_v48 }
 0x5ed   :  { %v1645_v50 = vpop.eup %1644 }
 0x5ee   :  { %575 = vrot.lane.b32.xlu1 %v1645_v50, %s1687_s4 }
 0x660   :  { %v576_v53 = vpop.permute.xlu1 %575 }
 0x661   :  { %v578_v55 = vmul.f32 %v576_v53, %v573_v51 }
 0x663   :  { %v580_v56 = vadd.f32 %v579_v54, %v578_v55 }
 0x665   :  { %582 = vrot.lane.b32.xlu0 %v580_v56, %s1687_s4 }
 0x6d7   :  { %v583_v57 = vpop.permute.xlu0 %582 }
 0x6d8   :  { %1480 = vmatmul.mubr.msk.f32.vlgmr.msra.gmra.mrb[10].mxu1 %vm236_vm10, %v583_v57 }
 0x6d9   :  { %1598 = vmatpush3.bf16.msra.mxu1 %v1817_v49  ;;  %1501 = vmatprep.mubr.msk.f32.mxu1 %vm1685_vm9, %v1683_v31 }
 0x6da   :  { %1599 = vmatprep.subr.bf16.mxu1 %v1684_v46 }
 0x6dd   :  { %1601 = vmatpush3.bf16.msra.mxu1 %v1827_v52 }
 0x6de   :  { %1608 = vmatprep.subr.bf16.mxu1 %v1684_v46 }
 0x7ab   :  { %v652_v58 = vpop.f32.mrb[10].mxu1 }
 0x7ac   :  { %v663_v59 = vadd.f32 %v652_v58, %v1875_v14  ;;  %v1481_v60 = vpop.f32.mrb[11].mxu1  ;;  %v656_v61 = vadd.f32 %v652_v58, %v1865_v5 }
 0x7ae   :  { %665 = vrot.lane.b32.xlu1 %v663_v59, %s1686_s30  ;;  %v1315_v62 = vmul.f32 -1.442695, %v656_v61 }
 0x7b0   :  { %1646 = vpow2.f32 %v1315_v62 }
 0x7ba   :  { %v1647_v63 = vpop.eup %1646 }
 0x7bb   :  { %v660_v0 = vadd.f32 1.0, %v1647_v63 }
 0x7bd   :  { %1648 = vrcp.f32 %v660_v0 }
 0x7c7   :  { %v1649_v1 = vpop.eup %1648 }
 0x7c8   :  { %v675_v12 = vsub.f32 1.0, %v1649_v1  ;;  %v681_v16 = vmul.f32 %v1649_v1, %v580_v56 }
 0x820   :  { %v666_v2 = vpop.permute.xlu1 %665 }
 0x821   :  { %v668_v4 = vmul.f32 %v1649_v1, %v666_v2 }
 0x823   :  { %670 = vrot.lane.b32.xlu0 %v668_v4, %s1686_s30 }
 0x895   :  { %v671_v6 = vpop.permute.xlu0 %670 }
 0x896   :  { %v673_v8 = vadd.f32 %v671_v6, %v1865_v5 }
 0x898   :  { %1650 = vtanh.f32 %v673_v8 }
 0x8a2   :  { %v1651_v10 = vpop.eup %1650 }
 0x8a3   :  { %677 = vrot.lane.b32.xlu1 %v1651_v10, %s1687_s4 }
 0x915   :  { %v678_v15 = vpop.permute.xlu1 %677 }
 0x916   :  { %v680_v17 = vmul.f32 %v678_v15, %v675_v12 }
 0x918   :  { %v682_v18 = vadd.f32 %v681_v16, %v680_v17 }
 0x91a   :  { %684 = vrot.lane.b32.xlu0 %v682_v18, %s1687_s4 }
 0x98c   :  { %v685_v19 = vpop.permute.xlu0 %684 }
 0x98d   :  { %1491 = vmatmul.mubr.msk.f32.vlgmr.msra.gmra.mrb[10].mxu0 %vm236_vm10, %v685_v19 }
 0x98e   :  { %1604 = vmatpush3.bf16.msra.mxu0 %v1817_v49  ;;  %1512 = vmatprep.mubr.msk.f32.mxu0 %vm1685_vm9, %v1683_v31 }
 0x98f   :  { %1605 = vmatprep.subr.bf16.mxu0 %v1684_v46 }
 0x992   :  { %1607 = vmatpush3.bf16.msra.mxu0 %v1827_v52 }
 0x993   :  { %1614 = vmatprep.subr.bf16.mxu0 %v1684_v46 }
 0xa60   :  { %v754_v5 = vpop.f32.mrb[10].mxu0 }
 0xa61   :  { %v765_v20 = vadd.f32 %v754_v5, %v1875_v14  ;;  %v1492_v21 = vpop.f32.mrb[11].mxu0  ;;  %v758_v22 = vadd.f32 %v754_v5, %v1863_v3 }
 0xa63   :  { %767 = vrot.lane.b32.xlu1 %v765_v20, %s1686_s30  ;;  %v1317_v23 = vmul.f32 -1.442695, %v758_v22 }
 0xa65   :  { %1652 = vpow2.f32 %v1317_v23 }
 0xa6f   :  { %v1653_v24 = vpop.eup %1652 }
 0xa70   :  { %v762_v25 = vadd.f32 1.0, %v1653_v24 }
 0xa72   :  { %1654 = vrcp.f32 %v762_v25 }
 0xa7c   :  { %v1655_v26 = vpop.eup %1654 }
 0xa7d   :  { %v777_v33 = vsub.f32 1.0, %v1655_v26  ;;  %v783_v35 = vmul.f32 %v1655_v26, %v682_v18 }
 0xad5   :  { %v768_v27 = vpop.permute.xlu1 %767 }
 0xad6   :  { %v770_v28 = vmul.f32 %v1655_v26, %v768_v27 }
 0xad8   :  { %772 = vrot.lane.b32.xlu0 %v770_v28, %s1686_s30 }
 0xb4a   :  { %v773_v29 = vpop.permute.xlu0 %772 }
 0xb4b   :  { %v775_v30 = vadd.f32 %v773_v29, %v1863_v3 }
 0xb4d   :  { %1656 = vtanh.f32 %v775_v30 }
 0xb57   :  { %v1657_v32 = vpop.eup %1656 }
 0xb58   :  { %779 = vrot.lane.b32.xlu1 %v1657_v32, %s1687_s4 }
 0xbca   :  { %v780_v34 = vpop.permute.xlu1 %779 }
 0xbcb   :  { %v782_v36 = vmul.f32 %v780_v34, %v777_v33 }
 0xbcd   :  { %v784_v37 = vadd.f32 %v783_v35, %v782_v36 }
 0xbcf   :  { %786 = vrot.lane.b32.xlu0 %v784_v37, %s1687_s4 }
 0xc41   :  { %v787_v38 = vpop.permute.xlu0 %786 }
 0xc42   :  { %1502 = vmatmul.mubr.msk.f32.vlgmr.msra.gmra.mrb[12].mxu1 %vm236_vm10, %v787_v38 }
 0xc43   :  { %1610 = vmatpush3.bf16.msra.mxu1 %v1817_v49  ;;  %1523 = vmatprep.mubr.msk.f32.mxu1 %vm1685_vm9, %v1683_v31 }
 0xc44   :  { %1611 = vmatprep.subr.bf16.mxu1 %v1684_v46 }
 0xc47   :  { %1613 = vmatpush3.bf16.msra.mxu1 %v1827_v52 }
 0xc48   :  { %1620 = vmatprep.subr.bf16.mxu1 %v1684_v46 }
 0xd15   :  { %v856_v3 = vpop.f32.mrb[12].mxu1 }
 0xd16   :  { %v867_v39 = vadd.f32 %v856_v3, %v1875_v14  ;;  %v1503_v40 = vpop.f32.mrb[13].mxu1  ;;  %v860_v41 = vadd.f32 %v856_v3, %v1869_v9 }
 0xd18   :  { %869 = vrot.lane.b32.xlu1 %v867_v39, %s1686_s30  ;;  %v1319_v42 = vmul.f32 -1.442695, %v860_v41 }
 0xd1a   :  { %1658 = vpow2.f32 %v1319_v42 }
 0xd24   :  { %v1659_v43 = vpop.eup %1658 }
 0xd25   :  { %v864_v44 = vadd.f32 1.0, %v1659_v43 }
 0xd27   :  { %1660 = vrcp.f32 %v864_v44 }
 0xd31   :  { %v1661_v45 = vpop.eup %1660 }
 0xd32   :  { %v879_v54 = vsub.f32 1.0, %v1661_v45  ;;  %v885_v56 = vmul.f32 %v1661_v45, %v784_v37 }
 0xd8a   :  { %v870_v47 = vpop.permute.xlu1 %869 }
 0xd8b   :  { %v872_v48 = vmul.f32 %v1661_v45, %v870_v47  ;;  %v1194_v47 = vld [vmem:[%s1995_s6 + $0x8] sm:$0xff] }
 0xd8d   :  { %874 = vrot.lane.b32.xlu0 %v872_v48, %s1686_s30  ;;  %v1195_v48 = vld [vmem:[%s1995_s6 + $0x10] sm:$0xff] }
 0xdff   :  { %v875_v50 = vpop.permute.xlu0 %874 }
 0xe00   :  { %v877_v51 = vadd.f32 %v875_v50, %v1869_v9 }
 0xe02   :  { %1662 = vtanh.f32 %v877_v51  ;;  %v1196_v51 = vld [vmem:[%s1995_s6 + $0x18] sm:$0xff] }
 0xe0c   :  { %v1663_v53 = vpop.eup %1662 }
 0xe0d   :  { %881 = vrot.lane.b32.xlu1 %v1663_v53, %s1687_s4 }
 0xe7f   :  { %v882_v55 = vpop.permute.xlu1 %881 }
 0xe80   :  { %v884_v57 = vmul.f32 %v882_v55, %v879_v54 }
 0xe82   :  { %v886_v58 = vadd.f32 %v885_v56, %v884_v57 }
 0xe84   :  { %888 = vrot.lane.b32.xlu0 %v886_v58, %s1687_s4 }
 0xef6   :  { %v889_v59 = vpop.permute.xlu0 %888 }
 0xef7   :  { %1513 = vmatmul.mubr.msk.f32.vlgmr.msra.gmra.mrb[12].mxu0 %vm236_vm10, %v889_v59 }
 0xef8   :  { %1616 = vmatpush3.bf16.msra.mxu0 %v1817_v49  ;;  %1534 = vmatprep.mubr.msk.f32.mxu0 %vm1685_vm9, %v1683_v31 }
 0xef9   :  { %1617 = vmatprep.subr.bf16.mxu0 %v1684_v46 }
 0xefc   :  { %1619 = vmatpush3.bf16.msra.mxu0 %v1827_v52 }
 0xfca   :  { %v958_v9 = vpop.f32.mrb[12].mxu0 }
 0xfcb   :  { %v969_v60 = vadd.f32 %v958_v9, %v1875_v14  ;;  %v1514_v61 = vpop.f32.mrb[13].mxu0  ;;  %v962_v62 = vadd.f32 %v958_v9, %v1867_v7  ;;  %v1326_v9 = vld [vmem:[%s1996_s7] ss:$0 sm:$0xff] }
 0xfcd   :  { %971 = vrot.lane.b32.xlu1 %v969_v60, %s1686_s30  ;;  %v1321_v63 = vmul.f32 -1.442695, %v962_v62 }
 0xfcf   :  { %1664 = vpow2.f32 %v1321_v63 }
 0xfd9   :  { %v1665_v0 = vpop.eup %1664 }
 0xfda   :  { %v966_v1 = vadd.f32 1.0, %v1665_v0 }
 0xfdc   :  { %1666 = vrcp.f32 %v966_v1 }
 0xfe6   :  { %v1667_v49 = vpop.eup %1666 }
 0xfe7   :  { %v981_v10 = vsub.f32 1.0, %v1667_v49  ;;  %v987_v15 = vmul.f32 %v1667_v49, %v886_v58 }
0x103f   :  { %v972_v2 = vpop.permute.xlu1 %971 }
0x1040   :  { %v974_v4 = vmul.f32 %v1667_v49, %v972_v2 }
0x1042   :  { %976 = vrot.lane.b32.xlu0 %v974_v4, %s1686_s30 }
0x10b4   :  { %v977_v6 = vpop.permute.xlu0 %976 }
0x10b5   :  { %v979_v52 = vadd.f32 %v977_v6, %v1867_v7 }
0x10b7   :  { %1668 = vtanh.f32 %v979_v52 }
0x10c1   :  { %v1669_v8 = vpop.eup %1668 }
0x10c2   :  { %983 = vrot.lane.b32.xlu1 %v1669_v8, %s1687_s4 }
0x1134   :  { %v984_v12 = vpop.permute.xlu1 %983 }
0x1135   :  { %v986_v16 = vmul.f32 %v984_v12, %v981_v10 }
0x1137   :  { %v988_v17 = vadd.f32 %v987_v15, %v986_v16 }
0x1139   :  { %990 = vrot.lane.b32.xlu0 %v988_v17, %s1687_s4 }
0x11ab   :  { %v991_v18 = vpop.permute.xlu0 %990 }
0x11ac   :  { %1524 = vmatmul.mubr.msk.f32.vlgmr.msra.gmra.mrb[14].mxu1 %vm236_vm10, %v991_v18 }
0x11ad   :  { %1545 = vmatprep.mubr.msk.f32.mxu1 %vm1685_vm9, %v1683_v31 }
0x127f   :  { %v1060_v19 = vpop.f32.mrb[14].mxu1 }
0x1280   :  { %v1071_v7 = vadd.f32 %v1060_v19, %v1875_v14  ;;  %v1525_v5 = vpop.f32.mrb[15].mxu1  ;;  %v1064_v20 = vadd.f32 %v1060_v19, %v1873_v13 }
0x1282   :  { %1073 = vrot.lane.b32.xlu1 %v1071_v7, %s1686_s30  ;;  %v1323_v21 = vmul.f32 -1.442695, %v1064_v20 }
0x1284   :  { %1670 = vpow2.f32 %v1323_v21 }
0x128e   :  { %v1671_v22 = vpop.eup %1670 }
0x128f   :  { %v1068_v23 = vadd.f32 1.0, %v1671_v22 }
0x1291   :  { %1672 = vrcp.f32 %v1068_v23 }
0x129b   :  { %v1673_v24 = vpop.eup %1672 }
0x129c   :  { %v1083_v29 = vsub.f32 1.0, %v1673_v24  ;;  %v1089_v32 = vmul.f32 %v1673_v24, %v988_v17 }
0x12f4   :  { %v1074_v25 = vpop.permute.xlu1 %1073 }
0x12f5   :  { %v1076_v26 = vmul.f32 %v1673_v24, %v1074_v25 }
0x12f7   :  { %1078 = vrot.lane.b32.xlu0 %v1076_v26, %s1686_s30 }
0x1369   :  { %v1079_v27 = vpop.permute.xlu0 %1078 }
0x136a   :  { %v1081_v31 = vadd.f32 %v1079_v27, %v1873_v13 }
0x136c   :  { %1674 = vtanh.f32 %v1081_v31 }
0x1376   :  { %v1675_v28 = vpop.eup %1674 }
0x1377   :  { %1085 = vrot.lane.b32.xlu1 %v1675_v28, %s1687_s4 }
0x13e9   :  { %v1086_v30 = vpop.permute.xlu1 %1085 }
0x13ea   :  { %v1088_v33 = vmul.f32 %v1086_v30, %v1083_v29 }
0x13ec   :  { %v1090_v34 = vadd.f32 %v1089_v32, %v1088_v33 }
0x13ee   :  { %1092 = vrot.lane.b32.xlu0 %v1090_v34, %s1687_s4 }
0x1460   :  { %v1093_v35 = vpop.permute.xlu0 %1092 }
0x1461   :  { %1535 = vmatmul.mubr.msk.f32.vlgmr.msra.gmra.mrb[14].mxu0 %vm236_vm10, %v1093_v35 }
0x1534   :  { %v1162_v36 = vpop.f32.mrb[14].mxu0 }
0x1535   :  { %v1173_v37 = vadd.f32 %v1162_v36, %v1875_v14  ;;  %v1536_v38 = vpop.f32.mrb[15].mxu0  ;;  %v1166_v13 = vadd.f32 %v1162_v36, %v1871_v11  ;;  %v1193_v14 = vld [vmem:[%s1995_s6] sm:$0xff] }
0x1536   :  { %v1621_v50 = vpack.c.bf16 %v1194_v47, %v1193_v14 }
0x1537   :  { %1175 = vrot.lane.b32.xlu1 %v1173_v37, %s1686_s30  ;;  %v1325_v3 = vmul.f32 -1.442695, %v1166_v13 }
0x1538   :  { %1622 = vmatpush3.bf16.msra.mxu1 %v1621_v50 }
0x1539   :  { %1676 = vpow2.f32 %v1325_v3  ;;  %1623 = vmatprep.subr.bf16.mxu1 %v1684_v46 }
0x1543   :  { %v1677_v39 = vpop.eup %1676 }
0x1544   :  { %v1170_v40 = vadd.f32 1.0, %v1677_v39 }
0x1546   :  { %1678 = vrcp.f32 %v1170_v40 }
0x1550   :  { %v1679_v41 = vpop.eup %1678 }
0x1551   :  { %v1185_v54 = vsub.f32 1.0, %v1679_v41  ;;  %v1191_v56 = vmul.f32 %v1679_v41, %v1090_v34 }
0x15a9   :  { %v1176_v42 = vpop.permute.xlu1 %1175 }
0x15aa   :  { %v1178_v43 = vmul.f32 %v1679_v41, %v1176_v42 }
0x15ac   :  { %1180 = vrot.lane.b32.xlu0 %v1178_v43, %s1686_s30 }
0x161e   :  { %v1181_v44 = vpop.permute.xlu0 %1180 }
0x161f   :  { %v1183_v45 = vadd.f32 %v1181_v44, %v1871_v11  ;;  %v1624_v11 = vpack.c.bf16 %v1196_v51, %v1195_v48 }
0x1621   :  { %1680 = vtanh.f32 %v1183_v45  ;;  %1625 = vmatpush3.bf16.msra.mxu1 %v1624_v11 }
0x162b   :  { %v1681_v53 = vpop.eup %1680 }
0x162c   :  { %1187 = vrot.lane.b32.xlu1 %v1681_v53, %s1687_s4 }
0x169e   :  { %v1188_v55 = vpop.permute.xlu1 %1187 }
0x169f   :  { %v1190_v57 = vmul.f32 %v1188_v55, %v1185_v54 }
0x16a1   :  { %v1192_v58 = vadd.f32 %v1191_v56, %v1190_v57 }
0x16a3   :  { %1205 = vrot.lane.b32.xlu0 %v1192_v58, %s1687_s4 }
0x1715   :  { %v1206_v59 = vpop.permute.xlu0 %1205 }
0x1716   :  { %1546 = vmatmul.mubr.msk.f32.vlgmr.msra.gmra.mrb[16].mxu1 %vm236_vm10, %v1206_v59 }
0x17e9   :  { %v1275_v60 = vpop.f32.mrb[16].mxu1 }
0x17ea   :  { %v1276_v46 = vadd.f32 %v1326_v9, %v1275_v60  ;;  %v1547_v61 = vpop.f32.mrb[17].mxu1 }
0x17ec   :  { %1280 = vst.msk [vmem:[%s1997_s8] sm:$0xff] %vm1279_vm11, %v1276_v46 }

</bundles_post_ra>
